<compile_context>
chip_gen: v7x
topology: tpu7x:2x2x1
jax: 0.10.0
libtpu: 0.0.40
codegen_flags: <defaults>
</compile_context>

<pallas_src>
import jax
import jax.numpy as jnp
from jax.experimental import pallas as pl
from jax.experimental.pallas import tpu as pltpu


def encoder_kernel(x_ref, w_ref, vec_ref, mask_ref, out_ref):
    # x_ref: (H, V)   (leading batch dim squeezed by BlockSpec)
    # w_ref: (V, 4V)  columns [0:3V] = fused q/k/v weight (pre-transposed, q pre-scaled),
    #                 columns [3V:4V] = linear_1 weight (pre-transposed)
    # vec_ref: (8, V) rows = [b_q*scale, b_k, b_v, b_lin1, ln1_g, ln1_b, ln2_g, ln2_b]
    # mask_ref: (V, V) precomputed 0/1 block-diagonal mask
    # out_ref: (H, 2V) = [encoder_output | softmax_weights]  (lane-dense packed store)
    H, V = x_ref.shape
    G = V // H

    x = x_ref[...]  # (H, V)

    # --- fused Q/K/V projection: one MXU push instead of three ---
    qkv = jnp.dot(x, w_ref[:, :3 * V], preferred_element_type=jnp.float32)  # (H, 3V)
    q = qkv[:, :V] + vec_ref[0:1, :]          # scale already folded into Wq / bq
    k = qkv[:, V:2 * V] + vec_ref[1:2, :]
    v = qkv[:, 2 * V:] + vec_ref[2:3, :]

    # --- "attention" = elementwise q*k (split_heads is a pure relayout) ---
    logits = q * k  # (H, V)

    # softmax over torch dim=1 of the (G, H, 1, H) split tensor == row axis here.
    # Exact division (matches PyTorch; no approx reciprocal).
    m = jnp.max(logits, axis=0, keepdims=True)
    e = jnp.exp(logits - m)
    w_hv = e / jnp.sum(e, axis=0, keepdims=True)  # (H, V)

    # --- batched per-group (H,H)@(H,H) matmul as ONE well-shaped MXU matmul.
    # bd_v[g*H+b, g*H+c] = v[b, g*H+c]; mask is a precomputed constant input.
    bd_v = mask_ref[...] * jnp.tile(v, (G, 1))                       # (V, V)
    y = jnp.dot(w_hv, bd_v, preferred_element_type=jnp.float32)      # (H, V)
    # small relayout to match torch.reshape(output, (H, V)) ordering
    attn = jnp.transpose(y.reshape(H, G, H), (1, 0, 2)).reshape(H, V)

    # --- Encoder tail ---
    # TODO(synk): nn.Dropout(0.05) is stochastic in train mode; implemented as identity here.
    res = x + attn
    mu = jnp.mean(res, axis=-1, keepdims=True)
    d = res - mu
    var = jnp.mean(d * d, axis=-1, keepdims=True)                    # two-pass (stable)
    ln1 = d * jax.lax.rsqrt(var + 1e-5) * vec_ref[4:5, :] + vec_ref[5:6, :]

    lin = jnp.dot(ln1, w_ref[:, 3 * V:], preferred_element_type=jnp.float32) + vec_ref[3:4, :]
    mu2 = jnp.mean(lin, axis=-1, keepdims=True)
    d2 = lin - mu2
    var2 = jnp.mean(d2 * d2, axis=-1, keepdims=True)
    ln2 = d2 * jax.lax.rsqrt(var2 + 1e-5) * vec_ref[6:7, :] + vec_ref[7:8, :]

    # dropout_2(linear_attention + attention) packed with the softmax weights:
    # single unmasked 128-lane-wide store.
    out_ref[...] = jnp.concatenate([ln2 + ln1, w_hv], axis=1)        # (H, 2V)


def encoder_forward(x, params):
    """x: (B, H, V) batch of independent encoder inputs.

    Returns (attn, weights) with attn (B, H, V) and weights (B, 1, V//H, H, H),
    each batch element exactly matching the PyTorch Encoder.forward semantics.
    """
    B, H, V = x.shape
    G = V // H

    w_all = params["w_all"]        # (V, 4V)
    vec_slab = params["vec_slab"]  # (8, V)
    bd_mask = params["bd_mask"]    # (V, V)

    # advisory cost hint so XLA schedules surrounding ops around this call
    flops = B * 2 * H * V * (3 * V + V + V)
    bytes_accessed = 4 * (B * H * V + V * 4 * V + V * V + 8 * V + B * H * 2 * V)
    cost = pl.CostEstimate(flops=flops,
                           transcendentals=B * (H * V + 2 * H),
                           bytes_accessed=bytes_accessed)

    # explicit VMEM budget: resident slabs + double-buffered per-step tiles + temps, with headroom
    resident = 4 * (V * 4 * V + V * V + 8 * V)
    per_step = 2 * 4 * (H * V + H * 2 * V)
    temps = 4 * (H * 3 * V + 2 * V * V + 8 * H * V)
    vmem_limit = max(4 * (resident + per_step + temps), 8 * 1024 * 1024)

    packed = pl.pallas_call(
        encoder_kernel,
        out_shape=jax.ShapeDtypeStruct((B, H, 2 * V), jnp.float32),
        grid=(B,),
        in_specs=[
            pl.BlockSpec((None, H, V), lambda b: (b, 0, 0)),   # x: per-batch tile
            pl.BlockSpec((V, 4 * V), lambda b: (0, 0)),        # weights: resident
            pl.BlockSpec((8, V), lambda b: (0, 0)),            # biases/LN params: resident
            pl.BlockSpec((V, V), lambda b: (0, 0)),            # block-diag mask: resident
        ],
        out_specs=pl.BlockSpec((None, H, 2 * V), lambda b: (b, 0, 0)),
        compiler_params=pltpu.CompilerParams(
            dimension_semantics=("parallel",),                 # use both TCs on v7x
            vmem_limit_bytes=vmem_limit,
        ),
        cost_estimate=cost,
    )(x, w_all, vec_slab, bd_mask)

    attn = packed[:, :, :V]
    w_hv = packed[:, :, V:]
    # torch returns weights with shape (1, V//H, H, H) per instance; relayout here
    # (wrapper-side, lane-dense kernel store) instead of inside the kernel.
    weights = jnp.transpose(w_hv.reshape(B, H, G, H), (0, 2, 1, 3)).reshape(B, 1, G, H, H)
    return attn, weights


def init_params(key, vocab_size, num_heads):
    V = vocab_size
    H = num_heads
    ks = jax.random.split(key, 8)
    bound = 1.0 / (V ** 0.5)  # PyTorch Linear default init range

    def u(k, shape):
        return jax.random.uniform(k, shape, jnp.float32, -bound, bound)

    # weights stored pre-transposed so the kernel computes x @ W^T + b
    wq_t, wk_t, wv_t = u(ks[0], (V, V)), u(ks[2], (V, V)), u(ks[4], (V, V))
    bq, bk, bv = u(ks[1], (V,)), u(ks[3], (V,)), u(ks[5], (V,))
    w1_t, b1 = u(ks[6], (V, V)), u(ks[7], (V,))

    # fold the 1/sqrt(H) attention scale into the query projection (one-time, costless)
    scale = 1.0 / (float(H) ** 0.5)
    wq_t = wq_t * scale
    bq = bq * scale

    # one resident weight slab: [Wq*s | Wk | Wv | W1]  -> (V, 4V)
    w_all = jnp.concatenate([wq_t, wk_t, wv_t, w1_t], axis=1)

    # one resident vector slab: 8 rows of length V (full 8-sublane tile)
    vec_slab = jnp.stack(
        [bq, bk, bv, b1,
         jnp.ones((V,), jnp.float32), jnp.zeros((V,), jnp.float32),   # LayerNorm 1 affine
         jnp.ones((V,), jnp.float32), jnp.zeros((V,), jnp.float32)],  # LayerNorm 2 affine
        axis=0)

    # precomputed 0/1 block-diagonal mask (constant structure; no runtime iotas in-kernel)
    r = jnp.arange(V)
    bd_mask = (r[:, None] // H == r[None, :] // H).astype(jnp.float32)

    return {"w_all": w_all, "vec_slab": vec_slab, "bd_mask": bd_mask}


if __name__ == "__main__":
    vocab_size = 64
    num_heads = 8   # must divide vocab_size
    batch = 4       # independent encoder instances, processed via grid=(B,)

    key = jax.random.PRNGKey(0)
    k_param, k_x = jax.random.split(key)
    params = init_params(k_param, vocab_size, num_heads)

    # input layout per instance: (num_heads, vocab_size)
    x = jax.random.normal(k_x, (batch, num_heads, vocab_size), jnp.float32)

    attn_out, weights_out = encoder_forward(x, params)
    jax.block_until_ready((attn_out, weights_out))

    assert attn_out.shape == (batch, num_heads, vocab_size)
    assert weights_out.shape == (batch, 1, vocab_size // num_heads, num_heads, num_heads)
    assert bool(jnp.all(jnp.isfinite(attn_out))) and bool(jnp.all(jnp.isfinite(weights_out)))
    print("KERNEL_OK")
</pallas_src>

<mosaic_0001>
module attributes {stable_mosaic.version = 11 : i64} {
  func.func @encoder_kernel(%arg0: i32, %arg1: memref<1x8x64xf32, #tpu.memory_space<vmem>>, %arg2: memref<64x256xf32, #tpu.memory_space<vmem>>, %arg3: memref<8x64xf32, #tpu.memory_space<vmem>>, %arg4: memref<64x64xf32, #tpu.memory_space<vmem>>, %arg5: memref<1x8x128xf32, #tpu.memory_space<vmem>>) attributes {dimension_semantics = [#tpu.dimension_semantics<parallel>], iteration_bounds = array<i64: 4>, scalar_prefetch = 0 : i64, scratch_operands = 0 : i64, tpu.core_type = #tpu.core_type<tc>, window_params = [{transform_indices = @transform_0, window_bounds = array<i64: 1, 8, 64>}, {pipeline_mode = #tpu.pipeline_mode<synchronous>, transform_indices = @transform_1, window_bounds = array<i64: 64, 256>}, {pipeline_mode = #tpu.pipeline_mode<synchronous>, transform_indices = @transform_2, window_bounds = array<i64: 8, 64>}, {pipeline_mode = #tpu.pipeline_mode<synchronous>, transform_indices = @transform_3, window_bounds = array<i64: 64, 64>}, {transform_indices = @transform_4, window_bounds = array<i64: 1, 8, 128>}]} {
    %c0 = arith.constant 0 : index
    %c0_0 = arith.constant 0 : index
    %c0_1 = arith.constant 0 : index
    %0 = vector.load %arg1[%c0, %c0_0, %c0_1] : memref<1x8x64xf32, #tpu.memory_space<vmem>>, vector<1x8x64xf32>
    %1 = vector.shape_cast %0 : vector<1x8x64xf32> to vector<8x64xf32>
    %c0_2 = arith.constant 0 : index
    %c0_3 = arith.constant 0 : index
    %2 = vector.load %arg2[%c0_2, %c0_3] : memref<64x256xf32, #tpu.memory_space<vmem>>, vector<64x192xf32>
    %cst = arith.constant dense<0.000000e+00> : vector<8x192xf32>
    %3 = tpu.matmul %1, %2, %cst {dimension_numbers = #tpu.dot_dimension_numbers<[1], [0], [0], [1], [0, 0, 1, 1], [], []>} : vector<8x64xf32>, vector<64x192xf32>, vector<8x192xf32> -> vector<8x192xf32>
    %4 = vector.extract_strided_slice %3 {offsets = [0, 0], sizes = [8, 64], strides = [1, 1]} : vector<8x192xf32> to vector<8x64xf32>
    %c0_4 = arith.constant 0 : index
    %c0_5 = arith.constant 0 : index
    %5 = vector.load %arg3[%c0_4, %c0_5] : memref<8x64xf32, #tpu.memory_space<vmem>>, vector<1x64xf32>
    %6 = vector.broadcast %5 : vector<1x64xf32> to vector<8x64xf32>
    %7 = arith.addf %4, %6 : vector<8x64xf32>
    %8 = vector.extract_strided_slice %3 {offsets = [0, 64], sizes = [8, 64], strides = [1, 1]} : vector<8x192xf32> to vector<8x64xf32>
    %c1 = arith.constant 1 : index
    %c0_6 = arith.constant 0 : index
    %9 = vector.load %arg3[%c1, %c0_6] : memref<8x64xf32, #tpu.memory_space<vmem>>, vector<1x64xf32>
    %10 = vector.broadcast %9 : vector<1x64xf32> to vector<8x64xf32>
    %11 = arith.addf %8, %10 : vector<8x64xf32>
    %12 = vector.extract_strided_slice %3 {offsets = [0, 128], sizes = [8, 64], strides = [1, 1]} : vector<8x192xf32> to vector<8x64xf32>
    %c2 = arith.constant 2 : index
    %c0_7 = arith.constant 0 : index
    %13 = vector.load %arg3[%c2, %c0_7] : memref<8x64xf32, #tpu.memory_space<vmem>>, vector<1x64xf32>
    %14 = vector.broadcast %13 : vector<1x64xf32> to vector<8x64xf32>
    %15 = arith.addf %12, %14 : vector<8x64xf32>
    %16 = arith.mulf %7, %11 : vector<8x64xf32>
    %cst_8 = arith.constant dense<0xFF800000> : vector<64xf32>
    %17 = vector.multi_reduction <maximumf>, %16, %cst_8 [0] : vector<8x64xf32> to vector<64xf32>
    %18 = vector.shape_cast %17 : vector<64xf32> to vector<1x64xf32>
    %19 = vector.broadcast %18 : vector<1x64xf32> to vector<8x64xf32>
    %20 = arith.subf %16, %19 : vector<8x64xf32>
    %21 = math.exp %20 : vector<8x64xf32>
    %cst_9 = arith.constant dense<0.000000e+00> : vector<64xf32>
    %22 = vector.multi_reduction <add>, %21, %cst_9 [0] : vector<8x64xf32> to vector<64xf32>
    %23 = vector.shape_cast %22 : vector<64xf32> to vector<1x64xf32>
    %24 = vector.broadcast %23 : vector<1x64xf32> to vector<8x64xf32>
    %25 = arith.divf %21, %24 : vector<8x64xf32>
    %c0_10 = arith.constant 0 : index
    %c0_11 = arith.constant 0 : index
    %26 = vector.load %arg4[%c0_10, %c0_11] : memref<64x64xf32, #tpu.memory_space<vmem>>, vector<64x64xf32>
    %27 = tpu.concatenate %15, %15, %15, %15, %15, %15, %15, %15 in 0 : vector<8x64xf32>, vector<8x64xf32>, vector<8x64xf32>, vector<8x64xf32>, vector<8x64xf32>, vector<8x64xf32>, vector<8x64xf32>, vector<8x64xf32> -> vector<64x64xf32>
    %28 = arith.mulf %26, %27 : vector<64x64xf32>
    %cst_12 = arith.constant dense<0.000000e+00> : vector<8x64xf32>
    %29 = tpu.matmul %25, %28, %cst_12 {dimension_numbers = #tpu.dot_dimension_numbers<[1], [0], [0], [1], [0, 0, 1, 1], [], []>} : vector<8x64xf32>, vector<64x64xf32>, vector<8x64xf32> -> vector<8x64xf32>
    %30 = vector.shape_cast %29 : vector<8x64xf32> to vector<8x8x8xf32>
    %31 = tpu.transpose %30, [1, 0, 2] : vector<8x8x8xf32> -> vector<8x8x8xf32>
    %32 = vector.shape_cast %31 : vector<8x8x8xf32> to vector<8x64xf32>
    %33 = arith.addf %1, %32 : vector<8x64xf32>
    %cst_13 = arith.constant dense<0.000000e+00> : vector<8xf32>
    %34 = vector.multi_reduction <add>, %33, %cst_13 [1] : vector<8x64xf32> to vector<8xf32>
    %35 = vector.shape_cast %34 : vector<8xf32> to vector<8x1xf32>
    %cst_14 = arith.constant 6.400000e+01 : f32
    %36 = vector.broadcast %cst_14 : f32 to vector<8x1xf32>
    %37 = arith.divf %35, %36 : vector<8x1xf32>
    %38 = vector.broadcast %37 : vector<8x1xf32> to vector<8x64xf32>
    %39 = arith.subf %33, %38 : vector<8x64xf32>
    %40 = arith.mulf %39, %39 : vector<8x64xf32>
    %cst_15 = arith.constant dense<0.000000e+00> : vector<8xf32>
    %41 = vector.multi_reduction <add>, %40, %cst_15 [1] : vector<8x64xf32> to vector<8xf32>
    %42 = vector.shape_cast %41 : vector<8xf32> to vector<8x1xf32>
    %cst_16 = arith.constant 6.400000e+01 : f32
    %43 = vector.broadcast %cst_16 : f32 to vector<8x1xf32>
    %44 = arith.divf %42, %43 : vector<8x1xf32>
    %cst_17 = arith.constant 9.99999974E-6 : f32
    %45 = vector.broadcast %cst_17 : f32 to vector<8x1xf32>
    %46 = arith.addf %44, %45 : vector<8x1xf32>
    %47 = math.rsqrt %46 : vector<8x1xf32>
    %48 = vector.broadcast %47 : vector<8x1xf32> to vector<8x64xf32>
    %49 = arith.mulf %39, %48 : vector<8x64xf32>
    %c4 = arith.constant 4 : index
    %c0_18 = arith.constant 0 : index
    %50 = vector.load %arg3[%c4, %c0_18] : memref<8x64xf32, #tpu.memory_space<vmem>>, vector<1x64xf32>
    %51 = vector.broadcast %50 : vector<1x64xf32> to vector<8x64xf32>
    %52 = arith.mulf %49, %51 : vector<8x64xf32>
    %c5 = arith.constant 5 : index
    %c0_19 = arith.constant 0 : index
    %53 = vector.load %arg3[%c5, %c0_19] : memref<8x64xf32, #tpu.memory_space<vmem>>, vector<1x64xf32>
    %54 = vector.broadcast %53 : vector<1x64xf32> to vector<8x64xf32>
    %55 = arith.addf %52, %54 : vector<8x64xf32>
    %c0_20 = arith.constant 0 : index
    %c192 = arith.constant 192 : index
    %56 = vector.load %arg2[%c0_20, %c192] : memref<64x256xf32, #tpu.memory_space<vmem>>, vector<64x64xf32>
    %cst_21 = arith.constant dense<0.000000e+00> : vector<8x64xf32>
    %57 = tpu.matmul %55, %56, %cst_21 {dimension_numbers = #tpu.dot_dimension_numbers<[1], [0], [0], [1], [0, 0, 1, 1], [], []>} : vector<8x64xf32>, vector<64x64xf32>, vector<8x64xf32> -> vector<8x64xf32>
    %c3 = arith.constant 3 : index
    %c0_22 = arith.constant 0 : index
    %58 = vector.load %arg3[%c3, %c0_22] : memref<8x64xf32, #tpu.memory_space<vmem>>, vector<1x64xf32>
    %59 = vector.broadcast %58 : vector<1x64xf32> to vector<8x64xf32>
    %60 = arith.addf %57, %59 : vector<8x64xf32>
    %cst_23 = arith.constant dense<0.000000e+00> : vector<8xf32>
    %61 = vector.multi_reduction <add>, %60, %cst_23 [1] : vector<8x64xf32> to vector<8xf32>
    %62 = vector.shape_cast %61 : vector<8xf32> to vector<8x1xf32>
    %cst_24 = arith.constant 6.400000e+01 : f32
    %63 = vector.broadcast %cst_24 : f32 to vector<8x1xf32>
    %64 = arith.divf %62, %63 : vector<8x1xf32>
    %65 = vector.broadcast %64 : vector<8x1xf32> to vector<8x64xf32>
    %66 = arith.subf %60, %65 : vector<8x64xf32>
    %67 = arith.mulf %66, %66 : vector<8x64xf32>
    %cst_25 = arith.constant dense<0.000000e+00> : vector<8xf32>
    %68 = vector.multi_reduction <add>, %67, %cst_25 [1] : vector<8x64xf32> to vector<8xf32>
    %69 = vector.shape_cast %68 : vector<8xf32> to vector<8x1xf32>
    %cst_26 = arith.constant 6.400000e+01 : f32
    %70 = vector.broadcast %cst_26 : f32 to vector<8x1xf32>
    %71 = arith.divf %69, %70 : vector<8x1xf32>
    %cst_27 = arith.constant 9.99999974E-6 : f32
    %72 = vector.broadcast %cst_27 : f32 to vector<8x1xf32>
    %73 = arith.addf %71, %72 : vector<8x1xf32>
    %74 = math.rsqrt %73 : vector<8x1xf32>
    %75 = vector.broadcast %74 : vector<8x1xf32> to vector<8x64xf32>
    %76 = arith.mulf %66, %75 : vector<8x64xf32>
    %c6 = arith.constant 6 : index
    %c0_28 = arith.constant 0 : index
    %77 = vector.load %arg3[%c6, %c0_28] : memref<8x64xf32, #tpu.memory_space<vmem>>, vector<1x64xf32>
    %78 = vector.broadcast %77 : vector<1x64xf32> to vector<8x64xf32>
    %79 = arith.mulf %76, %78 : vector<8x64xf32>
    %c7 = arith.constant 7 : index
    %c0_29 = arith.constant 0 : index
    %80 = vector.load %arg3[%c7, %c0_29] : memref<8x64xf32, #tpu.memory_space<vmem>>, vector<1x64xf32>
    %81 = vector.broadcast %80 : vector<1x64xf32> to vector<8x64xf32>
    %82 = arith.addf %79, %81 : vector<8x64xf32>
    %83 = arith.addf %82, %55 : vector<8x64xf32>
    %84 = tpu.concatenate %83, %25 in 1 : vector<8x64xf32>, vector<8x64xf32> -> vector<8x128xf32>
    %c0_30 = arith.constant 0 : index
    %c0_31 = arith.constant 0 : index
    %c0_32 = arith.constant 0 : index
    %85 = vector.load %arg5[%c0_30, %c0_31, %c0_32] : memref<1x8x128xf32, #tpu.memory_space<vmem>>, vector<1x8x128xf32>
    %86 = vector.shape_cast %85 : vector<1x8x128xf32> to vector<8x128xf32>
    %87 = vector.shape_cast %84 : vector<8x128xf32> to vector<1x8x128xf32>
    tpu.vector_store %arg5[%c0_30, %c0_31, %c0_32], %87 {strides = array<i32>} : memref<1x8x128xf32, #tpu.memory_space<vmem>>, vector<1x8x128xf32>,
    return
  }
  func.func @transform_0(%arg0: i32) -> (i32, i32, i32) {
    %c0_i32 = arith.constant 0 : i32
    %c0_i32_0 = arith.constant 0 : i32
    %c0_i32_1 = arith.constant 0 : i32
    return %arg0, %c0_i32, %c0_i32_0 : i32, i32, i32
  }
  func.func @transform_1(%arg0: i32) -> (i32, i32) {
    %c0_i32 = arith.constant 0 : i32
    %c0_i32_0 = arith.constant 0 : i32
    %c0_i32_1 = arith.constant 0 : i32
    return %c0_i32, %c0_i32_0 : i32, i32
  }
  func.func @transform_2(%arg0: i32) -> (i32, i32) {
    %c0_i32 = arith.constant 0 : i32
    %c0_i32_0 = arith.constant 0 : i32
    %c0_i32_1 = arith.constant 0 : i32
    return %c0_i32, %c0_i32_0 : i32, i32
  }
  func.func @transform_3(%arg0: i32) -> (i32, i32) {
    %c0_i32 = arith.constant 0 : i32
    %c0_i32_0 = arith.constant 0 : i32
    %c0_i32_1 = arith.constant 0 : i32
    return %c0_i32, %c0_i32_0 : i32, i32
  }
  func.func @transform_4(%arg0: i32) -> (i32, i32, i32) {
    %c0_i32 = arith.constant 0 : i32
    %c0_i32_0 = arith.constant 0 : i32
    %c0_i32_1 = arith.constant 0 : i32
    return %arg0, %c0_i32, %c0_i32_0 : i32, i32, i32
  }
}

</mosaic_0001>

<bundles_post_ra>
// kernel: tpu_custom_call.1
= control target key start
LH: loop header
LB: loop body
LE: loop exit
PB: predicated region body
PF: predicated region fallthrough
CT: control target
= control target key end

     0   :  { %9 = vsyncpa [#allocation3], 0  ;;  %s2136_s0 = inlined_call_operand.hbm [shape: f32[4,8,64], index: 0, kind: input, shape index: {}]   ;;  %s2137_s1 = inlined_call_operand.hbm [shape: f32[64,256], index: 1, kind: input, shape index: {}]   ;;  %s2138_s2 = inlined_call_operand.hbm [shape: f32[8,64], index: 2, kind: input, shape index: {}]   ;;  %s2139_s3 = inlined_call_operand.hbm [shape: f32[64,64], index: 3, kind: input, shape index: {}]   ;;  %s2140_s4 = inlined_call_operand.hbm [shape: f32[4,8,128], index: 4, kind: output, shape index: {}]  }
   0x1   :  { %11 = vsyncpa [#allocation3 + $0x1], 0 }
   0x2   :  { %12 = vsyncpa [#allocation6], 0 }
   0x3   :  { %13 = vsyncpa [#allocation9], 0 }
   0x4   :  { %14 = vsyncpa [#allocation4], 0 }
   0x5   :  { %16 = vsyncpa [#allocation4 + $0x1], 0  ;;  %s1757_s15 = smov 0   ;;  %s1759_s16 = smov 0  }
   0x6   :  { %s1761_s17 = smov 0   ;;  %s1763_s18 = smov 0  }
   0x7 LB: > { %s1778_s19 = sadd.s32 4294967295, %s1701_s18   ;;  %s1243_s20 = sadd.s32 4294967294, %s1701_s18   ;;  %s1701_s18 = sphi %s1763_s18, %s2162_s18   ;;  %s1697_s17 = sphi %s1761_s17, %s2161_s17   ;;  %s1693_s16 = sphi %s1759_s16, %s2160_s16   ;;  %s1689_s15 = sphi %s1757_s15, %s2159_s15  }
   0x8   : > { %p42_p0 = scmp.ne.s32.totalorder %s1693_s16, %s1689_s15  ;;  %p2141_p1 = scmp.eq.s32.totalorder %s1778_s19, 0 }
   0x9   : > { %p135_p3 = scmp.eq.s32.totalorder %s1243_s20, 3  ;;  %p1244_p5 = scmp.ge.s32.totalorder %s1701_s18, 1 }
   0xa   : > { %p1787_p4 = por %p2141_p1, %p42_p0  ;;  %p142_p7 = scmp.lt.s32.totalorder %s1701_s18, 5 }
   0xb   : > { %p1792_p6 = por %p135_p3, %p42_p0  ;;  %s1703_s24 = smov [#allocation5]  }
   0xc   : > { %s2144_s21 = scalar_select %p1787_p4, 1, 0 }
   0xd   : > { %s2145_s22 = scalar_select %p1792_p6, 1, 0 }
   0xe   : > { %p1797_p8 = pnand %p1244_p5, %p142_p7  ;;  %s154_s25 = sshll.u32 %s1703_s24, 4  ;;  %s1801_s25 = int_to_ptr.vmem [resolvable:$true] %s154_s25 }
   0xf   : > { %s1704_s27 = smov [#allocation7]   ;;  %s1705_s29 = smov [#allocation8]  }
  0x10   : > { %s2146_s23 = scalar_select %p1797_p8, 1, 0 }
  0x11   : > { %p1400_p9 = pneg %p1797_p8  ;;  %s168_s28 = sshll.u32 %s1704_s27, 4  ;;  %s1811_s28 = int_to_ptr.vmem [resolvable:$true] %s168_s28 }
  0x12   : > { %s1813_s30 = sshll.u32 %s1705_s29, 4  ;;  %s1513_s7 = scalar_lea.hbm %s2137_s1, 2048  ;;  %s179_s30 = int_to_ptr.vmem [resolvable:$true] %s1813_s30 }
  0x13   : > { %p1807_p10 = pnand %p1400_p9, %p2141_p1  ;;  %p1514_p11 = scmp.ne.s32.totalorder %s2137_s1, %s1513_s7 }
  0x14   : > { %p1520_p3 = scmp.lt.u32.totalorder %s1513_s7, %s2137_s1 }
  0x15   : > { %p1823_p12 = pneg %p1807_p10 }
  0x17   : > { %p1516_p13 = pnand %p1823_p12, %p1514_p11 }
  0x19   : > { %p1517_p0 = pneg %p1516_p13 }
  0x1b   : > { %p1522_p5 = pnand %p1520_p3, %p1517_p0 }
  0x1d   : > { %1525 = shalt.err (!%p1522_p5)
}
  0x1e   : > { %s1526_s13 = scalar_lea.vmem %s1801_s25, 2048  ;;  %p1534_p2 = scmp.lt.s32.totalorder %s1801_s25, %s1801_s25 }
  0x1f   : > { %p1527_p7 = scmp.ne.s32.totalorder %s1801_s25, %s1526_s13  ;;  %p1535_p6 = scmp.lt.s32.totalorder %s1526_s13, %s1526_s13 }
  0x21   : > { %p1529_p9 = pnand %p1527_p7, %p1823_p12  ;;  %p1536_p11 = por %p1535_p6, %p1534_p2 }
  0x23   : > { %p1530_p1 = pneg %p1529_p9 }
  0x25   : > { %p1537_p13 = pnand %p1536_p11, %p1530_p1 }
  0x27   : > { %1540 = shalt.err (!%p1537_p13)
}
  0x28   : > { %s1706_s14 = smov 256   ;;  %s1707_s20 = smov 16  }
  0x29   : > { %1403 = dma.hbm_to_vmem [thread:$0]  (!%p1807_p10), %s2137_s1, 2048, %s1801_s25, [#allocation6], %s1706_s14, %s1706_s14, %s1707_s20  }
  0x2a   : > { %s1541_s6 = scalar_lea.hbm %s2138_s2, 128 }
  0x2b   : > { %p1542_p2 = scmp.ne.s32.totalorder %s2138_s2, %s1541_s6  ;;  %p1548_p0 = scmp.lt.u32.totalorder %s1541_s6, %s2138_s2 }
  0x2d   : > { %p1544_p1 = pnand %p1542_p2, %p1823_p12 }
  0x2f   : > { %p1545_p6 = pneg %p1544_p1 }
  0x31   : > { %p1550_p3 = pnand %p1548_p0, %p1545_p6 }
  0x33   : > { %1553 = shalt.err (!%p1550_p3)
}
  0x34   : > { %s1554_s25 = scalar_lea.vmem %s1811_s28, 128  ;;  %p1562_p11 = scmp.lt.s32.totalorder %s1811_s28, %s1811_s28 }
  0x35   : > { %p1555_p5 = scmp.ne.s32.totalorder %s1811_s28, %s1554_s25  ;;  %p1563_p13 = scmp.lt.s32.totalorder %s1554_s25, %s1554_s25 }
  0x37   : > { %p1557_p7 = pnand %p1555_p5, %p1823_p12  ;;  %p1564_p2 = por %p1563_p13, %p1562_p11 }
  0x39   : > { %p1558_p9 = pneg %p1557_p7 }
  0x3b   : > { %p1565_p1 = pnand %p1564_p2, %p1558_p9 }
  0x3d   : > { %1568 = shalt.err (!%p1565_p1)
}
  0x3e   : > { %1406 = dma.hbm_to_vmem [thread:$0]  (!%p1807_p10), %s2138_s2, 128, %s1811_s28, [#allocation6]  }
  0x3f   : > { %s1569_s24 = scalar_lea.hbm %s2139_s3, 1024 }
  0x40   : > { %p1570_p6 = scmp.ne.s32.totalorder %s2139_s3, %s1569_s24  ;;  %p1576_p5 = scmp.lt.u32.totalorder %s1569_s24, %s2139_s3 }
  0x42   : > { %p1572_p0 = pnand %p1570_p6, %p1823_p12 }
  0x44   : > { %p1573_p3 = pneg %p1572_p0 }
  0x46   : > { %p1578_p7 = pnand %p1576_p5, %p1573_p3 }
  0x48   : > { %1581 = shalt.err (!%p1578_p7)
}
  0x49   : > { %s1582_s7 = scalar_lea.vmem %s179_s30, 1024  ;;  %p1590_p2 = scmp.lt.s32.totalorder %s179_s30, %s179_s30 }
  0x4a   : > { %p1583_p9 = scmp.ne.s32.totalorder %s179_s30, %s1582_s7  ;;  %p1591_p1 = scmp.lt.s32.totalorder %s1582_s7, %s1582_s7 }
  0x4c   : > { %p1585_p11 = pnand %p1583_p9, %p1823_p12  ;;  %p1592_p4 = por %p1591_p1, %p1590_p2 }
  0x4e   : > { %p1586_p13 = pneg %p1585_p11 }
  0x50   : > { %p1593_p8 = pnand %p1592_p4, %p1586_p13 }
  0x52   : > { %1596 = shalt.err (!%p1593_p8)
}
  0x53   : > { %s1708_s28 = smov 128   ;;  %s1709_s10 = smov 8  }
  0x54   : > { %1409 = dma.hbm_to_vmem [thread:$0]  (!%p1807_p10), %s2139_s3, 1024, %s179_s30, [#allocation9], %s1708_s28, %s1708_s28, %s1709_s10  }
  0x55   : > { %s1887_s11 = sadd.s32 1, %s1701_s18   ;;  %s29_s12 = sadd.s32 1, %s1697_s17 }
  0x56   : > { %s26_s25 = ssub.s32 %s1701_s18, %s1887_s11  ;;  %p36_p8 = scmp.ne.s32.totalorder %s1697_s17, %s1693_s16 }
  0x57   : > { %p27_p4 = scmp.eq.s32.totalorder %s26_s25, 0  ;;  %p37_p12 = scmp.eq.s32.totalorder %s1701_s18, 0 }
  0x58   : > { %p1421_p6 = scmp.lt.s32.totalorder %s1701_s18, 4  ;;  %p2149_p3 = scmp.eq.s32.totalorder %s1778_s19, 3 }
  0x59   : > { %s1897_s13 = scalar_select %p27_p4, %s1697_s17, %s29_s12  }
  0x5a   : > { %p38_p0 = por %p37_p12, %p36_p8  ;;  %p1901_p5 = por %p2149_p3, %p36_p8 }
  0x5b   : > { %s192_s26 = sand.u32 1, %s1697_s17   ;;  %s1250_s20 = sshll.u32 %s1701_s18, 7 }
  0x5c   : > { %s1249_s30 = sshll.u32 %s192_s26, 3  ;;  %s1910_s29 = scalar_lea.hbm %s2136_s0, %s1250_s20 }
  0x5d   : > { %s196_s5 = scalar_lea.vmem [#allocation2], %s1249_s30  ;;  %p1912_p10 = pnand %p1421_p6, %p38_p0 }
  0x5e   : > { %s203_s6 = sshll.u32 %s196_s5, 4  ;;  %s193_s28 = scalar_lea.sflag [#allocation3], %s192_s26  ;;  %s1916_s6 = int_to_ptr.vmem [resolvable:$true] %s203_s6 }
  0x5f   : > { %s1597_s10 = scalar_lea.hbm %s1910_s29, 128  ;;  %p1599_p9 = pneg %p1912_p10 }
  0x60   : > { %p1598_p7 = scmp.ne.s32.totalorder %s1910_s29, %s1597_s10  ;;  %s1602_s25 = scalar_lea.hbm %s2136_s0, 512 }
  0x61   : > { %p1603_p2 = scmp.lt.u32.totalorder %s1910_s29, %s2136_s0  ;;  %p1604_p1 = scmp.lt.u32.totalorder %s1602_s25, %s1597_s10 }
  0x62   : > { %p1600_p11 = pnand %p1599_p9, %p1598_p7  ;;  %p1606_p8 = scmp.lt.u32.totalorder %s1597_s10, %s1910_s29 }
  0x63   : > { %p1605_p4 = por %p1604_p1, %p1603_p2 }
  0x64   : > { %p1601_p13 = pneg %p1600_p11 }
  0x65   : > { %p1607_p12 = por %p1606_p8, %p1605_p4 }
  0x67   : > { %p1608_p6 = pnand %p1607_p12, %p1601_p13 }
  0x69   : > { %1611 = shalt.err (!%p1608_p6)
}
  0x6a   : > { %s1612_s26 = scalar_lea.vmem %s1916_s6, 128  ;;  %s1710_s30 = smov [#allocation2]  }
  0x6b   : > { %p1613_p0 = scmp.ne.s32.totalorder %s1916_s6, %s1612_s26  ;;  %s1617_s24 = sshll.u32 %s1710_s30, 4  ;;  %s1618_s24 = int_to_ptr.vmem [resolvable:$false] %s1617_s24 }
  0x6c   : > { %s1619_s27 = scalar_lea.vmem %s1618_s24, 256  ;;  %p1620_p11 = scmp.lt.s32.totalorder %s1916_s6, %s1618_s24 }
  0x6d   : > { %p1615_p3 = pnand %p1613_p0, %p1599_p9  ;;  %p1621_p2 = scmp.lt.s32.totalorder %s1619_s27, %s1612_s26 }
  0x6f   : > { %p1616_p7 = pneg %p1615_p3  ;;  %p1622_p1 = por %p1621_p2, %p1620_p11 }
  0x71   : > { %p1623_p4 = pnand %p1622_p1, %p1616_p7 }
  0x73   : > { %1626 = shalt.err (!%p1623_p4)
}
  0x74   : > { %1413 = dma.hbm_to_vmem [thread:$0]  (!%p1912_p10), %s1910_s29, 128, %s1916_s6, %s193_s28  }
  0x75   : > { %p2152_p13 = scmp.ne.s32.totalorder %s2146_s23, 0 }
  0x76   : > { %s1946_s5 = sand.u32 (!%p2152_p13), 1, %s1693_s16   ;;  %p2153_p9 = scmp.ne.s32.totalorder (!%p2152_p13), %s2144_s21, 0 }
  0x77   : > { %212 = sbr.rel (%p2152_p13) target bundleno = 1891 (0x763), region = 36  ;;  %s1252_s10 = sshll.u32 (!%p2152_p13), %s1946_s5, 3 }
  0x78   : > { %s215_s8 = scalar_lea.sflag (!%p2152_p13), [#allocation3], %s1946_s5  ;;  %s1952_s9 = scalar_lea.vmem (!%p2152_p13), [#allocation2], %s1252_s10 }
  0x7e   : > { %1672 = dma.done.wait (%p2153_p9), %s215_s8, 128  }
  0x7f   : > { %1674 = vsyncadd (%p2153_p9), %s215_s8, 4294967168  ;;  %p2154_p10 = scmp.eq.s32.totalorder %s1778_s19, 0 }
  0x81   : > { %1676 = dma.done.wait (%p2154_p10), [#allocation6], 2176   ;;  %p2155_p8 = pmov %p2154_p10 }
  0x83   : > { %1678 = vsyncadd (%p2155_p8), [#allocation6], 4294965120  ;;  %p2156_p12 = pmov %p2155_p8 }
  0x84   : > { %p2157_p6 = pmov %p2155_p8 }
  0x85   : > { %1680 = dma.done.wait (%p2156_p12), [#allocation9], 1024  }
  0x86   : > { %1682 = vsyncadd (%p2157_p6), [#allocation9], 4294966272  ;;  %v1711_v0 = vmov 0.0   ;;  %v1967_v1 = vld [vmem:[#allocation5 + $0x8] sm:$0xff]  ;;  %v1969_v2 = vld [vmem:[#allocation5 + $0x18] sm:$0xff]  ;;  %s1712_s21 = smov 64  }
  0x87   : > { %340 = vmatprep.mubr.f32.mxu0 %v1711_v0  ;;  %v256_v3 = vld [vmem:[#allocation5] sm:$0xff]  ;;  %v1344_v4 = vpack.c.bf16 %v1969_v2, %v1967_v1  ;;  %v258_v5 = vld [vmem:[#allocation5 + $0x10] sm:$0xff]  ;;  %v1973_v6 = vld [vmem:[#allocation5 + $0x28] sm:$0xff]  ;;  %vm272_vm0 = vcmask 523264   ;;  %v1713_v27 = vmov 0.0|0.0   ;;  %vm1714_vm1 = vmmov 0  }
  0x88   : > { %v1975_v7 = vld [vmem:[#allocation5 + $0x38] sm:$0xff]  ;;  %v1346_v8 = vpack.c.bf16 %v258_v5, %v256_v3  ;;  %v260_v10 = vld [vmem:[#allocation5 + $0x20] sm:$0xff]  ;;  %v262_v11 = vld [vmem:[#allocation5 + $0x30] sm:$0xff]  ;;  %1360 = vmatprep.subr.bf16.mxu1 %v1713_v27  ;;  %1322 = vmatprep.mubr.msk.f32.mxu1 %vm1714_vm1, %v1711_v0  ;;  %s1715_s23 = smov 104   ;;  %s1716_s29 = smov 120   ;;  %vm940_vm2 = vcmask 64512  }
  0x89   : > { %v1348_v9 = vpack.c.bf16 %v1975_v7, %v1973_v6  ;;  %v1979_v12 = vld [vmem:[#allocation5 + $0x48] sm:$0xff]  ;;  %1345 = vmatprep.subr.bf16.mxu0 %v1344_v4  ;;  %v1981_v13 = vld [vmem:[#allocation5 + $0x58] sm:$0xff]  ;;  %v1350_v14 = vpack.c.bf16 %v262_v11, %v260_v10  ;;  %v264_v16 = vld [vmem:[#allocation5 + $0x40] sm:$0xff]  ;;  %s1717_s6 = smov 88   ;;  %s1718_s7 = smov 112   ;;  %vm942_vm3 = vcmask 130048  }
  0x8a   : > { %1347 = vmatpush1.bf16.msra.mxu0 %v1346_v8  ;;  %v1352_v15 = vpack.c.bf16 %v1981_v13, %v1979_v12  ;;  %v266_v17 = vld [vmem:[#allocation5 + $0x50] sm:$0xff]  ;;  %v1259_v18 = vld [vmem:[#allocation7 + $0x1] ss:$0 sm:$0xff]  ;;  %v1985_v19 = vld [vmem:[#allocation5 + $0x68] sm:$0xff]  ;;  %s1719_s28 = smov 72   ;;  %s1720_s25 = smov 96  }
  0x8b   : > { %1349 = vmatprep.subr.bf16.mxu0 %v1348_v9  ;;  %v1987_v20 = vld [vmem:[#allocation5 + $0x78] sm:$0xff]  ;;  %359 = vrot.lane.b32.xlu0 %v1259_v18, %s1712_s21  ;;  %v1354_v21 = vpack.c.bf16 %v266_v17, %v264_v16  ;;  %v268_v23 = vld [vmem:[#allocation5 + $0x60] sm:$0xff]  ;;  %v270_v24 = vld [vmem:[#allocation5 + $0x70] sm:$0xff]  ;;  %s1721_s12 = smov 80   ;;  %s1724_s20 = smov 16   ;;  %vm944_vm4 = vcmask 195584  }
  0x8c   : > { %v1356_v22 = vpack.c.bf16 %v1987_v20, %v1985_v19  ;;  %v1358_v25 = vpack.c.bf16 %v270_v24, %v268_v23  ;;  %v1993_v26 = vld [vmem:[%s1952_s9] sm:$0xff]  ;;  %v1260_v29 = vld [vmem:[#allocation7 + $0x2] ss:$0 sm:$0xff]  ;;  %v393_v33 = vld [vmem:[#allocation8] sm:$0xff]  ;;  %v1722_v23 = vmov 1983009808  }
  0x8d   : > { %v394_v34 = vld [vmem:[#allocation8 + $0x8] sm:$0xff]  ;;  %v395_v36 = vld [vmem:[#allocation8 + $0x10] sm:$0xff]  ;;  %v396_v37 = vld [vmem:[#allocation8 + $0x18] sm:$0xff]  ;;  %v507_v24 = vunpack.c.l.s4 %v1722_v23  ;;  %s1725_s26 = smov 8   ;;  %s1726_s30 = smov 32   ;;  %vm946_vm5 = vcmask 261120  }
  0x8e   : > { %1351 = vmatpush1.bf16.msra.mxu0 %v1350_v14  ;;  %v397_v43 = vld [vmem:[#allocation8 + $0x20] sm:$0xff]  ;;  %v398_v44 = vld [vmem:[#allocation8 + $0x28] sm:$0xff]  ;;  %v399_v48 = vld [vmem:[#allocation8 + $0x30] sm:$0xff]  ;;  %s1727_s24 = smov 24   ;;  %s1728_s27 = smov 48   ;;  %vm948_vm6 = vcmask 326656  }
  0x8f   : > { %1353 = vmatprep.subr.bf16.mxu0 %v1352_v15  ;;  %v400_v49 = vld [vmem:[#allocation8 + $0x38] sm:$0xff]  ;;  %s1729_s8 = smov 40   ;;  %s1730_s9 = smov 56   ;;  %vm950_vm7 = vcmask 392192   ;;  %vm952_vm8 = vcmask 457728  }
  0x90   : > { %v1258_v54 = vld [vmem:[#allocation7] ss:$0 sm:$0xff] }
  0x92   : > { %1355 = vmatpush1.bf16.msra.mxu0 %v1354_v21 }
  0x93   : > { %1357 = vmatprep.subr.bf16.mxu0 %v1356_v22 }
  0x96   : > { %1359 = vmatpush1.bf16.msra.mxu0 %v1358_v25  ;;  %v509_v25 = vlaneseq }
  0x97   : > { %1372 = vmatprep.subr.bf16.mxu0 %v1713_v27 }
  0x99   : > { %1257 = vmatmul.mubr.msk.f32.vlgmr.msra.gmra.mrb[0].mxu0 %vm272_vm0, %v1993_v26 }
  0x9a   : > { %1341 = vmatprep.mubr.msk.f32.mxu0 %vm1714_vm1, %v1711_v0 }
  0xfd   : > { %v360_v28 = vpop.permute.xlu0 %359 }
 0x16c   : > { %v342_v30 = vpop.f32.mrb[0].mxu0 }
 0x16d   : > { %v362_v31 = vadd.f32 %v360_v28, %v342_v30  ;;  %v344_v32 = vpop.f32.mrb[1].mxu0  ;;  %v352_v55 = vadd.f32 %v1258_v54, %v342_v30  ;;  %v1723_v28 = vmov 1934713408   ;;  %v508_v30 = vunpack.c.0.s8 %v507_v24 }
 0x16e   : > { %v368_v35 = vadd.f32 %v1260_v29, %v344_v32  ;;  %v571_v29 = vunpack.c.l.s4 %v1723_v28 }
 0x16f   : > { %370 = vrot.lane.b32.xlu0 %v362_v31, %s1712_s21  ;;  %v510_v31 = vshrl.u32 %v509_v25, 7 }
 0x170   : > { %v401_v38 = vmul.f32 %v393_v33, %v368_v35  ;;  %v402_v39 = vmul.f32 %v394_v34, %v368_v35  ;;  %v403_v41 = vmul.f32 %v395_v36, %v368_v35  ;;  %v404_v42 = vmul.f32 %v396_v37, %v368_v35 }
 0x171   : > { %v405_v46 = vmul.f32 %v397_v43, %v368_v35  ;;  %v406_v47 = vmul.f32 %v398_v44, %v368_v35  ;;  %v407_v51 = vmul.f32 %v399_v48, %v368_v35  ;;  %v408_v52 = vmul.f32 %v400_v49, %v368_v35 }
 0x172   : > { %v1361_v40 = vpack.c.bf16 %v402_v39, %v401_v38  ;;  %v1364_v45 = vpack.c.bf16 %v404_v42, %v403_v41  ;;  %v572_v34 = vunpack.c.0.s8 %v571_v29  ;;  %v2011_v35 = vsub.s32 %v508_v30, %v510_v31 }
 0x173   : > { %v1367_v50 = vpack.c.bf16 %v406_v47, %v405_v46  ;;  %v1370_v53 = vpack.c.bf16 %v408_v52, %v407_v51 }
 0x174   : > { %1362 = vmatpush3.bf16.msra.mxu1 %v1361_v40  ;;  %v2013_v42 = vsub.s32 %v572_v34, %v510_v31 }
 0x175   : > { %1363 = vmatprep.subr.bf16.mxu1 %v1713_v27 }
 0x178   : > { %1365 = vmatpush3.bf16.msra.mxu1 %v1364_v45 }
 0x179   : > { %1366 = vmatprep.subr.bf16.mxu1 %v1713_v27 }
 0x17c   : > { %1368 = vmatpush3.bf16.msra.mxu1 %v1367_v50 }
 0x17d   : > { %1369 = vmatprep.subr.bf16.mxu1 %v1713_v27 }
 0x180   : > { %1371 = vmatpush3.bf16.msra.mxu1 %v1370_v53 }
 0x1e1   : > { %v371_v56 = vpop.permute.xlu0 %370 }
 0x1e2   : > { %v373_v57 = vmul.f32 %v371_v56, %v352_v55 }
 0x1e4   : > { %v374_v58 = vsel %vm272_vm0, %v373_v57, -inf }
 0x1e5   : > { %v375_v59 = vrot.slane %v374_v58, 4 }
 0x1e7   : > { %v376_v60 = vmax.f32 %v374_v58, %v375_v59 }
 0x1e9   : > { %v377_v61 = vrot.slane %v376_v60, 2 }
 0x1eb   : > { %v378_v62 = vmax.f32 %v376_v60, %v377_v61 }
 0x1ed   : > { %v379_v63 = vrot.slane %v378_v62, 1 }
 0x1ef   : > { %v380_v3 = vmax.f32 %v378_v62, %v379_v63 }
 0x1f1   : > { %v381_v4 = vsub.f32 %v373_v57, %v380_v3 }
 0x1f3   : > { %v382_v5 = vmul.f32 1.442695, %v381_v4 }
 0x1f5   : > { %1505 = vpow2.f32 %v382_v5 }
 0x1ff   : > { %v1506_v8 = vpop.eup %1505 }
 0x200   : > { %v384_v9 = vsel %vm272_vm0, %v1506_v8, 0.0 }
 0x201   : > { %v385_v10 = vrot.slane %v384_v9, 4 }
 0x203   : > { %v386_v0 = vadd.f32 %v385_v10, %v384_v9 }
 0x205   : > { %v387_v11 = vrot.slane %v386_v0, 2 }
 0x207   : > { %v388_v14 = vadd.f32 %v387_v11, %v386_v0 }
 0x209   : > { %v389_v15 = vrot.slane %v388_v14, 1 }
 0x20b   : > { %v390_v16 = vadd.f32 %v389_v15, %v388_v14 }
 0x20d   : > { %1507 = vrcp.f32 %v390_v16 }
 0x217   : > { %v1508_v17 = vpop.eup %1507 }
 0x218   : > { %v2007_v18 = vmul.f32 %v1508_v17, %v1506_v8 }
 0x21a   : > { %1323 = vmatmul.mubr.msk.f32.vlgmr.msra.gmra.mrb[0].mxu1 %vm272_vm0, %v2007_v18 }
 0x2ed   : > { %v478_v21 = vpop.f32.mrb[0].mxu1 }
 0x2ee   : > { %489 = vrot.lane.b32.xlu0 %v478_v21, %s1715_s23  ;;  %483 = vrot.lane.b32.xlu1 %v478_v21, %s1716_s29  ;;  %v1324_v22 = vpop.f32.mrb[1].mxu1  ;;  %s254_s23 = scalar_lea.vmem [#allocation10], %s1252_s10  ;;  %s1731_s10 = smov [#allocation10]  }
 0x2ef   : > { %s1144_s29 = sshll.u32 %s254_s23, 4  ;;  %s2094_s29 = int_to_ptr.vmem [resolvable:$true] %s1144_s29 }
 0x2f2   : > { %495 = vrot.lane.b32.xlu0 %v478_v21, %s1717_s6  ;;  %486 = vrot.lane.b32.xlu1 %v478_v21, %s1718_s7 }
 0x2f6   : > { %501 = vrot.lane.b32.xlu0 %v478_v21, %s1719_s28  ;;  %492 = vrot.lane.b32.xlu1 %v478_v21, %s1720_s25  ;;  %s1131_s25 = scalar_lea.sflag [#allocation4], %s1946_s5 }
 0x2fa   : > { %498 = vrot.lane.b32.xlu1 %v478_v21, %s1721_s12  ;;  %s1631_s12 = sshll.u32 %s1731_s10, 4  ;;  %s1632_s12 = int_to_ptr.vmem [resolvable:$false] %s1631_s12 }
 0x2fb   : > { %p1634_p11 = scmp.lt.s32.totalorder %s2094_s29, %s1632_s12 }
 0x360   : > { %v490_v32 = vpop.permute.xlu0 %489  ;;  %v484_v33 = vpop.permute.xlu1 %483 }
 0x361   : > { %v520_v36 = vcombine.low %v484_v33, %v490_v32  ;;  %v521_v37 = vcombine.high %v484_v33, %v490_v32 }
 0x363   : > { %v528_v43 = vrot.slane %v520_v36, %v2011_v35  ;;  %v535_v44 = vrot.slane %v521_v37, %v2011_v35 }
 0x364   : > { %v496_v38 = vpop.permute.xlu0 %495  ;;  %v487_v39 = vpop.permute.xlu1 %486 }
 0x365   : > { %v504_v40 = vcombine.low %v478_v21, %v487_v39  ;;  %v505_v41 = vcombine.high %v478_v21, %v487_v39 }
 0x367   : > { %v512_v45 = vrot.slane %v504_v40, %v2011_v35  ;;  %v519_v46 = vrot.slane %v505_v41, %v2011_v35 }
 0x368   : > { %v493_v47 = vpop.permute.xlu1 %492  ;;  %v502_v52 = vpop.permute.xlu0 %501 }
 0x369   : > { %v568_v48 = vcombine.low %v512_v45, %v528_v43  ;;  %v569_v49 = vcombine.high %v512_v45, %v528_v43  ;;  %v584_v50 = vcombine.low %v519_v46, %v535_v44  ;;  %v585_v51 = vcombine.high %v519_v46, %v535_v44 }
 0x36a   : > { %v552_v57 = vcombine.low %v496_v38, %v502_v52  ;;  %v553_v58 = vcombine.high %v496_v38, %v502_v52 }
 0x36b   : > { %v576_v53 = vrot.slane %v568_v48, %v2013_v42  ;;  %v583_v54 = vrot.slane %v569_v49, %v2013_v42  ;;  %v592_v55 = vrot.slane %v584_v50, %v2013_v42  ;;  %v599_v56 = vrot.slane %v585_v51, %v2013_v42 }
 0x36c   : > { %v499_v59 = vpop.permute.xlu1 %498  ;;  %v560_v0 = vrot.slane %v552_v57, %v2011_v35  ;;  %v567_v11 = vrot.slane %v553_v58, %v2011_v35 }
 0x36d   : > { %v1262_v60 = vcombine.low %v576_v53, %v583_v54  ;;  %v1264_v61 = vcombine.high %v576_v53, %v583_v54  ;;  %v1266_v62 = vcombine.low %v592_v55, %v599_v56  ;;  %v1268_v63 = vcombine.high %v592_v55, %v599_v56 }
 0x36e   : > { %v536_v3 = vcombine.low %v493_v47, %v499_v59  ;;  %v537_v4 = vcombine.high %v493_v47, %v499_v59 }
 0x36f   : > { %v648_v5 = vrot.slane %v1262_v60, %v2011_v35  ;;  %v664_v8 = vrot.slane %v1264_v61, %v2011_v35  ;;  %v680_v9 = vrot.slane %v1266_v62, %v2011_v35  ;;  %v696_v10 = vrot.slane %v1268_v63, %v2011_v35 }
 0x370   : > { %v544_v14 = vrot.slane %v536_v3, %v2011_v35  ;;  %v551_v15 = vrot.slane %v537_v4, %v2011_v35 }
 0x371   : > { %v704_v16 = vcombine.low %v648_v5, %v664_v8  ;;  %v705_v17 = vcombine.high %v648_v5, %v664_v8  ;;  %v736_v25 = vcombine.low %v680_v9, %v696_v10  ;;  %v737_v28 = vcombine.high %v680_v9, %v696_v10 }
 0x372   : > { %v600_v21 = vcombine.low %v544_v14, %v560_v0  ;;  %v601_v22 = vcombine.high %v544_v14, %v560_v0  ;;  %v616_v23 = vcombine.low %v551_v15, %v567_v11  ;;  %v617_v24 = vcombine.high %v551_v15, %v567_v11 }
 0x373   : > { %v712_v29 = vrot.slane %v704_v16, %v2013_v42  ;;  %v719_v30 = vrot.slane %v705_v17, %v2013_v42  ;;  %v744_v43 = vrot.slane %v736_v25, %v2013_v42  ;;  %v751_v44 = vrot.slane %v737_v28, %v2013_v42 }
 0x374   : > { %v608_v31 = vrot.slane %v600_v21, %v2013_v42  ;;  %v615_v32 = vrot.slane %v601_v22, %v2013_v42  ;;  %v624_v33 = vrot.slane %v616_v23, %v2013_v42  ;;  %v631_v34 = vrot.slane %v617_v24, %v2013_v42 }
 0x375   : > { %v1270_v40 = vcombine.low %v712_v29, %v719_v30  ;;  %v1272_v41 = vcombine.high %v712_v29, %v719_v30  ;;  %v1271_v55 = vcombine.low %v744_v43, %v751_v44  ;;  %v1273_v56 = vcombine.high %v744_v43, %v751_v44 }
 0x376   : > { %v1263_v36 = vcombine.low %v608_v31, %v615_v32  ;;  %v1265_v37 = vcombine.high %v608_v31, %v615_v32  ;;  %v1267_v38 = vcombine.low %v624_v33, %v631_v34  ;;  %v1269_v39 = vcombine.high %v624_v33, %v631_v34 }
 0x377   : > { %v784_v53 = vrot.slane %v1270_v40, %v2011_v35  ;;  %v800_v54 = vrot.slane %v1272_v41, %v2011_v35  ;;  %v791_v8 = vrot.slane %v1271_v55, %v2011_v35  ;;  %v807_v9 = vrot.slane %v1273_v56, %v2011_v35 }
 0x378   : > { %v655_v45 = vrot.slane %v1263_v36, %v2011_v35  ;;  %v671_v46 = vrot.slane %v1265_v37, %v2011_v35  ;;  %v687_v47 = vrot.slane %v1267_v38, %v2011_v35  ;;  %v703_v48 = vrot.slane %v1269_v39, %v2011_v35 }
 0x379   : > { %v841_v4 = vcombine.high %v784_v53, %v800_v54  ;;  %v840_v5 = vcombine.low %v784_v53, %v800_v54  ;;  %v856_v21 = vcombine.low %v791_v8, %v807_v9  ;;  %v857_v33 = vcombine.high %v791_v8, %v807_v9 }
 0x37a   : > { %v720_v49 = vcombine.low %v655_v45, %v671_v46  ;;  %v721_v50 = vcombine.high %v655_v45, %v671_v46  ;;  %v752_v51 = vcombine.low %v687_v47, %v703_v48  ;;  %v753_v52 = vcombine.high %v687_v47, %v703_v48 }
 0x37b   : > { %v855_v22 = vrot.slane %v841_v4, %v2013_v42  ;;  %v848_v24 = vrot.slane %v840_v5, %v2013_v42  ;;  %v871_v38 = vrot.slane %v857_v33, %v2013_v42  ;;  %v1490_v43 = vpack.i.bf16 %v1975_v7, %v1973_v6 }
 0x37c   : > { %v728_v57 = vrot.slane %v720_v49, %v2013_v42  ;;  %v735_v58 = vrot.slane %v721_v50, %v2013_v42  ;;  %v760_v59 = vrot.slane %v752_v51, %v2013_v42  ;;  %v767_v60 = vrot.slane %v753_v52, %v2013_v42 }
 0x37e   : > { %v1274_v61 = vcombine.low %v728_v57, %v735_v58  ;;  %v1276_v62 = vcombine.high %v728_v57, %v735_v58  ;;  %v1275_v63 = vcombine.low %v760_v59, %v767_v60  ;;  %v1277_v3 = vcombine.high %v760_v59, %v767_v60 }
 0x37f   : > { %v1485_v57 = vpack.i.bf16 %v1969_v2, %v1967_v1  ;;  %v1495_v58 = vpack.i.bf16 %v1981_v13, %v1979_v12  ;;  %v1500_v12 = vpack.i.bf16 %v1987_v20, %v1985_v19  ;;  %v1278_v19 = vld [vmem:[#allocation7 + $0x4] ss:$0 sm:$0xff] }
 0x380   : > { %v816_v10 = vrot.slane %v1274_v61, %v2011_v35  ;;  %v832_v0 = vrot.slane %v1276_v62, %v2011_v35  ;;  %v823_v11 = vrot.slane %v1275_v63, %v2011_v35  ;;  %v839_v14 = vrot.slane %v1277_v3, %v2011_v35 }
 0x381   : > { %v864_v35 = vrot.slane %v856_v21, %v2013_v42 }
 0x382   : > { %v873_v15 = vcombine.high %v816_v10, %v832_v0  ;;  %v872_v16 = vcombine.low %v816_v10, %v832_v0  ;;  %v888_v17 = vcombine.low %v823_v11, %v839_v14  ;;  %v889_v31 = vcombine.high %v823_v11, %v839_v14 }
 0x384   : > { %v887_v23 = vrot.slane %v873_v15, %v2013_v42  ;;  %v880_v25 = vrot.slane %v872_v16, %v2013_v42  ;;  %v896_v30 = vrot.slane %v888_v17, %v2013_v42  ;;  %v903_v37 = vrot.slane %v889_v31, %v2013_v42 }
 0x386   : > { %v906_v28 = vcombine.low %v855_v22, %v887_v23  ;;  %v905_v29 = vcombine.high %v848_v24, %v880_v25  ;;  %v904_v32 = vcombine.low %v848_v24, %v880_v25  ;;  %v908_v34 = vcombine.low %v864_v35, %v896_v30  ;;  %v1279_v25 = vld [vmem:[#allocation7 + $0x5] ss:$0 sm:$0xff] }
 0x387   : > { %v907_v36 = vcombine.high %v855_v22, %v887_v23  ;;  %v910_v39 = vcombine.low %v871_v38, %v903_v37  ;;  %v909_v40 = vcombine.high %v864_v35, %v896_v30  ;;  %v911_v41 = vcombine.high %v871_v38, %v903_v37  ;;  %v1280_v30 = vld [vmem:[#allocation7 + $0x3] ss:$0 sm:$0xff] }
 0x388   : > { %917 = vrot.lane.b32.xlu0 %v906_v28, %s1724_s20  ;;  %913 = vrot.lane.b32.xlu1 %v905_v29, %s1725_s26  ;;  %s1633_s20 = scalar_lea.vmem %s1632_s12, 256 }
 0x38c   : > { %925 = vrot.lane.b32.xlu0 %v908_v34, %s1726_s30  ;;  %921 = vrot.lane.b32.xlu1 %v907_v36, %s1727_s24 }
 0x390   : > { %933 = vrot.lane.b32.xlu0 %v910_v39, %s1728_s27  ;;  %929 = vrot.lane.b32.xlu1 %v909_v40, %s1729_s8 }
 0x394   : > { %937 = vrot.lane.b32.xlu1 %v911_v41, %s1730_s9 }
 0x398   : > { %1491 = vrot.lane.b32.xlu1 %v1490_v43, %s1712_s21 }
 0x3fa   : > { %v918_v44 = vpop.permute.xlu0 %917  ;;  %v914_v45 = vpop.permute.xlu1 %913 }
 0x3fb   : > { %v941_v46 = vsel %vm940_vm2, %v904_v32, %v914_v45 }
 0x3fc   : > { %v943_v48 = vsel %vm942_vm3, %v941_v46, %v918_v44  ;;  %v1282_v44 = vld [vmem:[#allocation7 + $0x6] ss:$0 sm:$0xff]  ;;  %v1283_v46 = vld [vmem:[#allocation7 + $0x7] ss:$0 sm:$0xff] }
 0x3fe   : > { %v926_v42 = vpop.permute.xlu0 %925  ;;  %v922_v47 = vpop.permute.xlu1 %921 }
 0x3ff   : > { %v945_v49 = vsel %vm944_vm4, %v943_v48, %v922_v47 }
 0x400   : > { %v947_v51 = vsel %vm946_vm5, %v945_v49, %v926_v42 }
 0x402   : > { %v930_v50 = vpop.permute.xlu1 %929  ;;  %v934_v52 = vpop.permute.xlu0 %933 }
 0x403   : > { %v949_v53 = vsel %vm948_vm6, %v947_v51, %v930_v50 }
 0x404   : > { %v951_v7 = vsel %vm950_vm7, %v949_v53, %v934_v52 }
 0x406   : > { %v938_v6 = vpop.permute.xlu1 %937 }
 0x407   : > { %v953_v54 = vsel %vm952_vm8, %v951_v7, %v938_v6 }
 0x408   : > { %v954_v55 = vadd.f32 %v953_v54, %v1993_v26 }
 0x40a   : > { %v955_v56 = vsel %vm272_vm0, %v954_v55, 0.0  ;;  %v1492_v61 = vpop.permute.xlu1 %1491 }
 0x40b   : > { %956 = vadd.xlane.f32.xlu0 %v955_v56  ;;  %v1494_v3 = vunpack.i.h.bf16 %v1492_v61  ;;  %v1493_v8 = vunpack.i.l.bf16 %v1492_v61 }
 0x40d   : > { %v1376_v2 = vpack.c.bf16 %v1494_v3, %v1493_v8 }
 0x421   : > { %1486 = vrot.lane.b32.xlu0 %v1485_v57, %s1712_s21 }
 0x425   : > { %1496 = vrot.lane.b32.xlu0 %v1495_v58, %s1712_s21 }
 0x498   : > { %v957_v59 = vpop.xlane.xlu0 %956 }
 0x499   : > { %v959_v60 = vmul.f32 0.015625, %v957_v59 }
 0x49b   : > { %v960_v62 = vsub.f32 %v954_v55, %v959_v60 }
 0x49c   : > { %v1487_v63 = vpop.permute.xlu0 %1486 }
 0x49d   : > { %v961_v26 = vmul.f32 %v960_v62, %v960_v62  ;;  %v1489_v4 = vunpack.i.h.bf16 %v1487_v63  ;;  %v1488_v5 = vunpack.i.l.bf16 %v1487_v63 }
 0x49f   : > { %v962_v9 = vsel %vm272_vm0, %v961_v26, 0.0  ;;  %v1373_v1 = vpack.c.bf16 %v1489_v4, %v1488_v5 }
 0x4a0   : > { %963 = vadd.xlane.f32.xlu1 %v962_v9  ;;  %v1497_v13 = vpop.permute.xlu0 %1496 }
 0x4a1   : > { %1374 = vmatpush3.bf16.msra.mxu0 %v1373_v1  ;;  %v1499_v10 = vunpack.i.h.bf16 %v1497_v13  ;;  %v1498_v0 = vunpack.i.l.bf16 %v1497_v13 }
 0x4a2   : > { %1375 = vmatprep.subr.bf16.mxu0 %v1713_v27 }
 0x4a3   : > { %v1379_v11 = vpack.c.bf16 %v1499_v10, %v1498_v0 }
 0x4a5   : > { %1377 = vmatpush3.bf16.msra.mxu0 %v1376_v2 }
 0x4a6   : > { %1378 = vmatprep.subr.bf16.mxu0 %v1713_v27 }
 0x4a9   : > { %1380 = vmatpush3.bf16.msra.mxu0 %v1379_v11 }
 0x4aa   : > { %1381 = vmatprep.subr.bf16.mxu0 %v1713_v27 }
 0x4b1   : > { %1501 = vrot.lane.b32.xlu1 %v1500_v12, %s1712_s21 }
 0x52d   : > { %v964_v14 = vpop.xlane.xlu1 %963 }
 0x52e   : > { %v965_v15 = vmul.f32 0.015625, %v964_v14 }
 0x530   : > { %v966_v16 = vadd.f32 1e-05, %v965_v15 }
 0x531   : > { %v1502_v17 = vpop.permute.xlu1 %1501 }
 0x532   : > { %1509 = vrsqrt.f32 %v966_v16  ;;  %v1504_v21 = vunpack.i.h.bf16 %v1502_v17  ;;  %v1503_v22 = vunpack.i.l.bf16 %v1502_v17 }
 0x534   : > { %v1382_v23 = vpack.c.bf16 %v1504_v21, %v1503_v22 }
 0x536   : > { %1383 = vmatpush3.bf16.msra.mxu0 %v1382_v23 }
 0x53c   : > { %v1510_v24 = vpop.eup %1509 }
 0x53d   : > { %v968_v20 = vmul.f32 %v1510_v24, %v960_v62 }
 0x53f   : > { %v974_v28 = vmul.f32 %v1278_v19, %v968_v20 }
 0x541   : > { %v980_v29 = vadd.f32 %v1279_v25, %v974_v28 }
 0x543   : > { %1342 = vmatmul.mubr.msk.f32.vlgmr.msra.gmra.mrb[2].mxu0 %vm272_vm0, %v980_v29 }
 0x616   : > { %v1095_v31 = vpop.f32.mrb[2].mxu0 }
 0x617   : > { %v1096_v27 = vadd.f32 %v1280_v30, %v1095_v31  ;;  %v1343_v32 = vpop.f32.mrb[3].mxu0 }
 0x619   : > { %v1099_v35 = vsel %vm272_vm0, %v1096_v27, 0.0 }
 0x61a   : > { %1100 = vadd.xlane.f32.xlu0 %v1099_v35 }
 0x630   : > { %1125 = vrot.lane.b32.xlu0 %v2007_v18, %s1712_s21  ;;  %s1285_s21 = sshll.u32 %s1778_s19, 7  ;;  %s1627_s19 = scalar_lea.vmem %s2094_s29, 128 }
 0x631   : > { %s2092_s28 = scalar_lea.hbm %s2140_s4, %s1285_s21  ;;  %p1628_p0 = scmp.ne.s32.totalorder %s2094_s29, %s1627_s19 }
 0x632   : > { %p1635_p2 = scmp.lt.s32.totalorder %s1633_s20, %s1627_s19 }
 0x633   : > { %p1629_p3 = pnand %p1628_p0, %p1901_p5 }
 0x634   : > { %p1636_p1 = por %p1635_p2, %p1634_p11 }
 0x635   : > { %p1630_p7 = pneg %p1629_p3 }
 0x637   : > { %p1637_p4 = pnand %p1636_p1, %p1630_p7 }
 0x6a7   : > { %v1101_v33 = vpop.xlane.xlu0 %1100 }
 0x6a8   : > { %v1102_v34 = vmul.f32 0.015625, %v1101_v33 }
 0x6aa   : > { %v1103_v36 = vsub.f32 %v1096_v27, %v1102_v34 }
 0x6ab   : > { %v1126_v48 = vpop.permute.xlu0 %1125 }
 0x6ac   : > { %v1104_v37 = vmul.f32 %v1103_v36, %v1103_v36 }
 0x6ae   : > { %v1105_v38 = vsel %vm272_vm0, %v1104_v37, 0.0 }
 0x6af   : > { %1106 = vadd.xlane.f32.xlu1 %v1105_v38 }
 0x73c   : > { %v1107_v39 = vpop.xlane.xlu1 %1106 }
 0x73d   : > { %v1108_v40 = vmul.f32 0.015625, %v1107_v39 }
 0x73f   : > { %v1109_v41 = vadd.f32 1e-05, %v1108_v40 }
 0x741   : > { %1511 = vrsqrt.f32 %v1109_v41 }
 0x74b   : > { %v1512_v43 = vpop.eup %1511 }
 0x74c   : > { %v1111_v45 = vmul.f32 %v1512_v43, %v1103_v36 }
 0x74e   : > { %v1117_v18 = vmul.f32 %v1282_v44, %v1111_v45 }
 0x750   : > { %v1123_v42 = vadd.f32 %v1283_v46, %v1117_v18 }
 0x752   : > { %v1124_v47 = vadd.f32 %v1123_v42, %v980_v29 }
 0x754   : > { %v1128_v49 = vsel %vm272_vm0, %v1124_v47, %v1126_v48 }
 0x755   : > { %1129 = vst [vmem:[%s254_s23] sm:$0xff] %v1128_v49 }
 0x756   : > { %1640 = shalt.err (!%p1637_p4)
}
 0x757   : > { %s1641_s5 = scalar_lea.hbm %s2092_s28, 128  ;;  %s1645_s24 = scalar_lea.hbm %s2140_s4, 512 }
 0x758   : > { %p1642_p13 = scmp.ne.s32.totalorder %s2092_s28, %s1641_s5  ;;  %p1646_p8 = scmp.lt.u32.totalorder %s2092_s28, %s2140_s4 }
 0x759   : > { %p1647_p12 = scmp.lt.u32.totalorder %s1645_s24, %s1641_s5  ;;  %p1649_p0 = scmp.lt.u32.totalorder %s1641_s5, %s2092_s28 }
 0x75a   : > { %p1643_p9 = pnand %p1642_p13, %p1901_p5 }
 0x75b   : > { %p1648_p6 = por %p1647_p12, %p1646_p8 }
 0x75c   : > { %p1644_p10 = pneg %p1643_p9 }
 0x75d   : > { %p1650_p3 = por %p1649_p0, %p1648_p6 }
 0x75f   : > { %p1651_p7 = pnand %p1650_p3, %p1644_p10 }
 0x761   : > { %1654 = shalt.err (!%p1651_p7)
}
 0x762   : > { %1398 = dma.vmem_to_hbm [thread:$0]  (%p1901_p5), %s2094_s29, 128, %s2092_s28, %s1131_s25  }
 0x763 PF: > { %p1425_p11 = scmp.ge.s32.totalorder %s1701_s18, 2  ;;  %s1156_s9 = sand.u32 1, %s1689_s15  }
 0x764   : > { %p2158_p2 = scmp.ne.s32.totalorder %s2145_s22, 0  ;;  %s1157_s21 = scalar_lea.sflag [#allocation4], %s1156_s9 }
 0x766   : > { %p1415_p1 = pnand %p1425_p11, %p2158_p2 }
 0x768   : > { %1684 = dma.done.wait (!%p1415_p1), %s1157_s21, 128  }
 0x769   : > { %1686 = vsyncadd (!%p1415_p1), %s1157_s21, 4294967168  ;;  %p19_p4 = scmp.ge.s32.totalorder %s1887_s11, 6   ;;  %s2159_s15 = smov %s1693_s16 }
 0x76a   : > { %s2160_s16 = smov %s1697_s17  ;;  %s2161_s17 = smov %s1897_s13 }
 0x76b   : > { %s2162_s18 = smov %s1887_s11  ;;  %21 = sbr.rel (!%p19_p4) target bundleno = 7 (0x7), region = 93 }
 0x772   :  { %1162 = vsyncpa [#allocation3], 1 }
 0x773   :  { %1164 = vsyncpa [#allocation3 + $0x1], 1 }
 0x774   :  { %1165 = vsyncpa [#allocation6], 1 }
 0x775   :  { %1166 = vsyncpa [#allocation9], 1 }
 0x776   :  { %1167 = vsyncpa [#allocation4], 1 }
 0x777   :  { %1169 = vsyncpa [#allocation4 + $0x1], 1 }

</bundles_post_ra>
